<compile_context>
chip_gen: v5e
topology: v5e:2x2
jax: 0.10.0
libtpu: 0.0.40
codegen_flags: <defaults>
</compile_context>

<pallas_src>
import functools

import numpy as np
import jax
import jax.numpy as jnp
from jax import lax
from jax.experimental import pallas as pl
from jax.experimental.pallas import tpu as pltpu


def _rup(v, m):
    return ((v + m - 1) // m) * m


# -----------------------------------------------------------------------------
# Pallas kernel: packed complex matmul, computed transposed & lane-dense.
#   out^T (Fp2, M) = B_pack^T (Fp2, Kp) @ A_pack^T (Kp, M)
# with A_pack^T rows = [Ar^T ; Ai^T] and B_pack^T = [[Br, -Bi], [Bi, Br]],
# so out^T rows [0:F] = real part and rows [F:2F] = imag part.
# -----------------------------------------------------------------------------
def _packed_matmul_kernel(b_ref, a_ref, o_ref, acc_ref):
    @pl.when(pl.program_id(1) == 0)
    def _():
        acc_ref[...] = jnp.zeros_like(acc_ref)

    acc_ref[...] += jnp.dot(b_ref[...], a_ref[...],
                            preferred_element_type=jnp.float32)

    @pl.when(pl.program_id(1) == pl.num_programs(1) - 1)
    def _():
        o_ref[...] = acc_ref[...]


def packed_complex_matmul_pallas(bT, aT, *, tm_max=1024, tk_max=1024):
    """bT: (F2, Kc), aT: (Kc, M) -> (Fp2, M) float32 (rows zero-padded to Fp2)."""
    F2, Kc = bT.shape
    Kca, M = aT.shape
    assert Kca == Kc

    bT = bT.astype(jnp.bfloat16)
    aT = aT.astype(jnp.bfloat16)

    # Sublane (bf16 -> multiple of 16) padding of the small output axis.
    Fp2 = _rup(F2, 16)

    # Contraction (K) tiling: single step when it fits, otherwise tk_max tiles.
    Kc16 = _rup(Kc, 16)
    tk = min(Kc16, tk_max)
    Kp = _rup(Kc16, tk)

    # Lane (M) tiling; prefer >= 2 grid steps so the "parallel" axis can shard
    # across the two v7x TensorCores.
    Mp128 = _rup(M, 128)
    tm = min(tm_max, Mp128)
    if Mp128 // tm < 2 and Mp128 >= 256:
        tm = _rup(Mp128 // 2, 128)
    Mp = _rup(M, tm)

    if (Fp2, Kp) != bT.shape:
        bT = jnp.pad(bT, ((0, Fp2 - F2), (0, Kp - Kc)))
    if (Kp, Mp) != aT.shape:
        aT = jnp.pad(aT, ((0, Kp - Kc), (0, Mp - M)))

    grid = (Mp // tm, Kp // tk)            # reduction axis last
    b_spec = pl.BlockSpec((Fp2, tk), lambda i, k: (0, k))
    a_spec = pl.BlockSpec((tk, tm), lambda i, k: (k, i))
    o_spec = pl.BlockSpec((Fp2, tm), lambda i, k: (0, i))

    blk_bytes = (2 * tk * tm * 2           # A blocks (double-buffered, bf16)
                 + 2 * Fp2 * tk * 2        # B blocks (double-buffered, bf16)
                 + 2 * Fp2 * tm * 4        # out blocks (double-buffered, f32)
                 + Fp2 * tm * 4)           # f32 accumulator scratch
    vmem_limit = int(min(64 * 1024 * 1024,
                         max(8 * 1024 * 1024, 4 * blk_bytes)))

    cost = pl.CostEstimate(
        flops=2 * Fp2 * Kp * Mp,
        transcendentals=0,
        bytes_accessed=int(Fp2 * Kp * 2 + Kp * Mp * 2 + Fp2 * Mp * 4),
    )

    out = pl.pallas_call(
        _packed_matmul_kernel,
        out_shape=jax.ShapeDtypeStruct((Fp2, Mp), jnp.float32),
        grid_spec=pltpu.PrefetchScalarGridSpec(
            num_scalar_prefetch=0,
            grid=grid,
            in_specs=[b_spec, a_spec],
            out_specs=o_spec,
            scratch_shapes=[pltpu.VMEM((Fp2, tm), jnp.float32)],
        ),
        compiler_params=pltpu.CompilerParams(
            dimension_semantics=("parallel", "arbitrary"),
            vmem_limit_bytes=vmem_limit,
        ),
        cost_estimate=cost,
    )(bT, aT)

    return out[:, :M] if Mp > M else out


# -----------------------------------------------------------------------------
# One ComplexPadConv3d layer (stride=1, symmetric padding) on real/imag planes.
# -----------------------------------------------------------------------------
def complex_padconv3d_planes(xr, xi, wr, wi, *, tm_max=1024):
    """xr, xi: (C, N, D, H, W) float planes; wr, wi: (F, C, K, K, K) float32.

    Returns (out_r, out_i): (F, N, D, H, W) float32 planes.
    """
    C, N, D, H, W = xr.shape
    F, Cw, K = wr.shape[0], wr.shape[1], wr.shape[2]
    assert Cw == C
    p = K // 2
    M = N * D * H * W
    K3 = K ** 3
    CK3 = C * K3

    pad_width = ((0, 0), (0, 0), (p, p), (p, p), (p, p))
    # optoth.pad3d(mode='symmetric') == np.pad mode='symmetric'
    xpr = jnp.pad(xr.astype(jnp.bfloat16), pad_width, mode="symmetric")
    xpi = jnp.pad(xi.astype(jnp.bfloat16), pad_width, mode="symmetric")
    xpack = jnp.stack([xpr, xpi], axis=0)            # (2, C, N, Dp, Hp, Wp)

    # im2col emitted directly in the transposed packed bf16 layout
    # A_pack^T (2*CK3, M): rows [0:CK3] = real patches (c, kd, kh, kw order),
    # rows [CK3:2CK3] = imag patches, matching the weight reshape order.
    # TODO(synk): fully fusing the patch extraction into the Pallas kernel
    # (halo'd DMA of x + shifted dots in VMEM) would remove the remaining
    # K^3-fold HBM blowup of this bf16 patch matrix.
    slices = []
    for kd in range(K):
        for kh in range(K):
            for kw in range(K):
                slices.append(xpack[:, :, :, kd:kd + D, kh:kh + H, kw:kw + W])
    patches = jnp.stack(slices, axis=2)              # (2, C, K3, N, D, H, W)
    aT = patches.reshape(2 * CK3, M)                 # (2*CK3, M) bf16

    # Packed weight B_pack^T (2F, 2*CK3): rows [0:F] -> real out, [F:2F] -> imag.
    wr2 = wr.reshape(F, CK3)
    wi2 = wi.reshape(F, CK3)
    top = jnp.concatenate([wr2, -wi2], axis=1)
    bot = jnp.concatenate([wi2, wr2], axis=1)
    bT = jnp.concatenate([top, bot], axis=0)         # (2F, 2*CK3)

    out = packed_complex_matmul_pallas(bT, aT, tm_max=tm_max)  # (Fp2, M) f32
    out_r = out[:F].reshape(F, N, D, H, W)
    out_i = out[F:2 * F].reshape(F, N, D, H, W)
    return out_r, out_i


# -----------------------------------------------------------------------------
# Parameter initialization (matches ComplexPadConv.__init__ incl. l2_proj(True))
# -----------------------------------------------------------------------------
def init_complex_padconv3d_weight(key, filters, in_channels, kernel_size,
                                  zero_mean, bound_norm):
    k = kernel_size
    # torch init: normal(0, sqrt(1 / (in_channels * prod(kernel_size))))
    std = np.sqrt(1.0 / (in_channels * np.prod(k)))
    kr, ki = jax.random.split(key)
    wr = std * jax.random.normal(kr, (filters, in_channels, k, k, k), jnp.float32)
    wi = std * jax.random.normal(ki, (filters, in_channels, k, k, k), jnp.float32)
    w = (wr + 1j * wi).astype(jnp.complex64)
    red = (1, 2, 3, 4)  # reduction_dim for rank=3
    if zero_mean:
        mean = jnp.sum(w, axis=red, keepdims=True) / (in_channels * k ** 3)
        w = w - mean
    if bound_norm:
        norm = jnp.sqrt(jnp.sum(jnp.real(jnp.conj(w) * w), axis=red, keepdims=True))
        w = w / norm  # l2_proj(surface=True)
    return w.astype(jnp.complex64)


# -----------------------------------------------------------------------------
# Full forward: conv_xy -> conv_t, complex64 formed only at the end.
# -----------------------------------------------------------------------------
@jax.jit
def _forward_impl(x, wxy_r, wxy_i, wt_r, wt_i):
    # x: (N, C, D, H, W) complex64 -> (N, F, D, H, W) complex64
    xr = jnp.real(x).transpose(1, 0, 2, 3, 4)   # (C, N, D, H, W) f32
    xi = jnp.imag(x).transpose(1, 0, 2, 3, 4)
    yr, yi = complex_padconv3d_planes(xr, xi, wxy_r, wxy_i)   # conv_xy
    zr, zi = complex_padconv3d_planes(yr, yi, wt_r, wt_i)     # conv_t
    out = (zr + 1j * zi).astype(jnp.complex64)                # (F, N, D, H, W)
    return jnp.transpose(out, (1, 0, 2, 3, 4))


class ComplexPadConv2DtPallas:
    """Forward-only JAX/Pallas port of merlinth ComplexPadConv2Dt (stride=1)."""

    def __init__(self, key, in_channels, intermediate_filters, filters,
                 kernel_size=3):
        # TODO(synk): stride > 2 (ComplexPadConvScale3d blurred-weight path) is
        # not implemented; the module default stride=1 uses ComplexPadConv3d
        # for both convs.
        k1, k2 = jax.random.split(key)
        self.w_xy = init_complex_padconv3d_weight(
            k1, intermediate_filters, in_channels, kernel_size,
            zero_mean=True, bound_norm=True)
        self.w_t = init_complex_padconv3d_weight(
            k2, filters, intermediate_filters, kernel_size,
            zero_mean=False, bound_norm=True)
        self._wxy_r = jnp.real(self.w_xy).astype(jnp.float32)
        self._wxy_i = jnp.imag(self.w_xy).astype(jnp.float32)
        self._wt_r = jnp.real(self.w_t).astype(jnp.float32)
        self._wt_i = jnp.imag(self.w_t).astype(jnp.float32)

    def __call__(self, x):
        return _forward_impl(x, self._wxy_r, self._wxy_i,
                             self._wt_r, self._wt_i)


# -----------------------------------------------------------------------------
# Pure-JAX reference (f32 lax.conv) for correctness check
# -----------------------------------------------------------------------------
def _ref_complex_padconv3d(x, w):
    K = w.shape[2]
    p = K // 2
    pad_width = ((0, 0), (0, 0), (p, p), (p, p), (p, p))
    xr = jnp.pad(jnp.real(x), pad_width, mode="symmetric")
    xi = jnp.pad(jnp.imag(x), pad_width, mode="symmetric")
    dn = lax.conv_dimension_numbers(xr.shape, jnp.real(w).shape,
                                    ("NCDHW", "OIDHW", "NCDHW"))
    conv = functools.partial(lax.conv_general_dilated,
                             window_strides=(1, 1, 1), padding="VALID",
                             dimension_numbers=dn)
    wr, wi = jnp.real(w), jnp.imag(w)
    rr = conv(xr, wr)
    ii = conv(xi, wi)
    ri = conv(xr, wi)
    ir = conv(xi, wr)
    return ((rr - ii) + 1j * (ri + ir)).astype(jnp.complex64)


def _ref_forward(x, w_xy, w_t):
    return _ref_complex_padconv3d(_ref_complex_padconv3d(x, w_xy), w_t)


# -----------------------------------------------------------------------------
if __name__ == "__main__":
    key = jax.random.PRNGKey(0)
    k_mod, k_xr, k_xi = jax.random.split(key, 3)

    # small shapes: N=2, C_in=2, D(time)=4, H=8, W=8
    in_channels, intermediate_filters, filters = 2, 4, 4
    N, D, H, W = 2, 4, 8, 8

    xr = jax.random.normal(k_xr, (N, in_channels, D, H, W), jnp.float32)
    xi = jax.random.normal(k_xi, (N, in_channels, D, H, W), jnp.float32)
    x = (xr + 1j * xi).astype(jnp.complex64)

    model = ComplexPadConv2DtPallas(k_mod, in_channels, intermediate_filters,
                                    filters, kernel_size=3)

    out = jax.block_until_ready(model(x))
    ref = jax.block_until_ready(_ref_forward(x, model.w_xy, model.w_t))

    assert out.shape == (N, filters, D, H, W), out.shape
    assert out.dtype == jnp.complex64

    out_np = np.asarray(out)
    ref_np = np.asarray(ref)
    # Inputs/weights are fed to the MXU in bf16 (f32 accumulation), so compare
    # with a relative Frobenius-norm tolerance vs the f32 reference.
    rel_err = np.linalg.norm(out_np - ref_np) / np.linalg.norm(ref_np)
    assert np.isfinite(out_np).all()
    assert rel_err < 3e-2, f"relative L2 error too large: {rel_err}"
    print("KERNEL_OK")
</pallas_src>

<mosaic_0001>
module attributes {stable_mosaic.version = 11 : i64} {
  func.func @_packed_matmul_kernel(%arg0: i32, %arg1: i32, %arg2: memref<16x112xbf16, #tpu.memory_space<vmem>>, %arg3: memref<112x256xbf16, #tpu.memory_space<vmem>>, %arg4: memref<16x256xf32, #tpu.memory_space<vmem>>, %arg5: memref<16x256xf32, #tpu.memory_space<vmem>>) attributes {dimension_semantics = [#tpu.dimension_semantics<parallel>, #tpu.dimension_semantics<arbitrary>], iteration_bounds = array<i64: 2, 1>, scalar_prefetch = 0 : i64, scratch_operands = 1 : i64, tpu.core_type = #tpu.core_type<tc>, window_params = [{transform_indices = @transform_0, window_bounds = array<i64: 16, 112>}, {transform_indices = @transform_1, window_bounds = array<i64: 112, 256>}, {transform_indices = @transform_2, window_bounds = array<i64: 16, 256>}]} {
    %c0_i32 = arith.constant 0 : i32
    %0 = arith.cmpi eq, %arg1, %c0_i32 : i32
    %1 = arith.extui %0 : i1 to i32
    %c0_i32_0 = arith.constant 0 : i32
    %2 = arith.cmpi ne, %1, %c0_i32_0 : i32
    scf.if %2 {
      %cst_10 = arith.constant 0.000000e+00 : f32
      %12 = vector.broadcast %cst_10 : f32 to vector<16x256xf32>
      %c0_11 = arith.constant 0 : index
      %c0_12 = arith.constant 0 : index
      %13 = vector.load %arg5[%c0_11, %c0_12] : memref<16x256xf32, #tpu.memory_space<vmem>>, vector<16x256xf32>
      tpu.vector_store %arg5[%c0_11, %c0_12], %12 {strides = array<i32>} : memref<16x256xf32, #tpu.memory_space<vmem>>, vector<16x256xf32>,
    } else {
    }
    %c0 = arith.constant 0 : index
    %c0_1 = arith.constant 0 : index
    %3 = vector.load %arg5[%c0, %c0_1] : memref<16x256xf32, #tpu.memory_space<vmem>>, vector<16x256xf32>
    %c0_2 = arith.constant 0 : index
    %c0_3 = arith.constant 0 : index
    %4 = vector.load %arg2[%c0_2, %c0_3] : memref<16x112xbf16, #tpu.memory_space<vmem>>, vector<16x112xbf16>
    %c0_4 = arith.constant 0 : index
    %c0_5 = arith.constant 0 : index
    %5 = vector.load %arg3[%c0_4, %c0_5] : memref<112x256xbf16, #tpu.memory_space<vmem>>, vector<112x256xbf16>
    %cst = arith.constant dense<0.000000e+00> : vector<16x256xf32>
    %6 = tpu.matmul %4, %5, %cst {dimension_numbers = #tpu.dot_dimension_numbers<[1], [0], [0], [1], [0, 0, 1, 1], [], []>} : vector<16x112xbf16>, vector<112x256xbf16>, vector<16x256xf32> -> vector<16x256xf32>
    %7 = arith.addf %3, %6 : vector<16x256xf32>
    %c0_6 = arith.constant 0 : index
    %c0_7 = arith.constant 0 : index
    %8 = vector.load %arg5[%c0_6, %c0_7] : memref<16x256xf32, #tpu.memory_space<vmem>>, vector<16x256xf32>
    tpu.vector_store %arg5[%c0_6, %c0_7], %7 {strides = array<i32>} : memref<16x256xf32, #tpu.memory_space<vmem>>, vector<16x256xf32>,
    %c0_i32_8 = arith.constant 0 : i32
    %9 = arith.cmpi eq, %arg1, %c0_i32_8 : i32
    %10 = arith.extui %9 : i1 to i32
    %c0_i32_9 = arith.constant 0 : i32
    %11 = arith.cmpi ne, %10, %c0_i32_9 : i32
    scf.if %11 {
      %c0_10 = arith.constant 0 : index
      %c0_11 = arith.constant 0 : index
      %12 = vector.load %arg5[%c0_10, %c0_11] : memref<16x256xf32, #tpu.memory_space<vmem>>, vector<16x256xf32>
      %c0_12 = arith.constant 0 : index
      %c0_13 = arith.constant 0 : index
      %13 = vector.load %arg4[%c0_12, %c0_13] : memref<16x256xf32, #tpu.memory_space<vmem>>, vector<16x256xf32>
      tpu.vector_store %arg4[%c0_12, %c0_13], %12 {strides = array<i32>} : memref<16x256xf32, #tpu.memory_space<vmem>>, vector<16x256xf32>,
    } else {
    }
    return
  }
  func.func @transform_0(%arg0: i32, %arg1: i32) -> (i32, i32) {
    %c0_i32 = arith.constant 0 : i32
    %c0_i32_0 = arith.constant 0 : i32
    return %c0_i32, %arg1 : i32, i32
  }
  func.func @transform_1(%arg0: i32, %arg1: i32) -> (i32, i32) {
    %c0_i32 = arith.constant 0 : i32
    return %arg1, %arg0 : i32, i32
  }
  func.func @transform_2(%arg0: i32, %arg1: i32) -> (i32, i32) {
    %c0_i32 = arith.constant 0 : i32
    %c0_i32_0 = arith.constant 0 : i32
    return %c0_i32, %arg0 : i32, i32
  }
}

module attributes {stable_mosaic.version = 11 : i64} {
  func.func @_packed_matmul_kernel(%arg0: i32, %arg1: i32, %arg2: memref<16x224xbf16, #tpu.memory_space<vmem>>, %arg3: memref<224x256xbf16, #tpu.memory_space<vmem>>, %arg4: memref<16x256xf32, #tpu.memory_space<vmem>>, %arg5: memref<16x256xf32, #tpu.memory_space<vmem>>) attributes {dimension_semantics = [#tpu.dimension_semantics<parallel>, #tpu.dimension_semantics<arbitrary>], iteration_bounds = array<i64: 2, 1>, scalar_prefetch = 0 : i64, scratch_operands = 1 : i64, tpu.core_type = #tpu.core_type<tc>, window_params = [{transform_indices = @transform_0, window_bounds = array<i64: 16, 224>}, {transform_indices = @transform_1, window_bounds = array<i64: 224, 256>}, {transform_indices = @transform_2, window_bounds = array<i64: 16, 256>}]} {
    %c0_i32 = arith.constant 0 : i32
    %0 = arith.cmpi eq, %arg1, %c0_i32 : i32
    %1 = arith.extui %0 : i1 to i32
    %c0_i32_0 = arith.constant 0 : i32
    %2 = arith.cmpi ne, %1, %c0_i32_0 : i32
    scf.if %2 {
      %cst_10 = arith.constant 0.000000e+00 : f32
      %12 = vector.broadcast %cst_10 : f32 to vector<16x256xf32>
      %c0_11 = arith.constant 0 : index
      %c0_12 = arith.constant 0 : index
      %13 = vector.load %arg5[%c0_11, %c0_12] : memref<16x256xf32, #tpu.memory_space<vmem>>, vector<16x256xf32>
      tpu.vector_store %arg5[%c0_11, %c0_12], %12 {strides = array<i32>} : memref<16x256xf32, #tpu.memory_space<vmem>>, vector<16x256xf32>,
    } else {
    }
    %c0 = arith.constant 0 : index
    %c0_1 = arith.constant 0 : index
    %3 = vector.load %arg5[%c0, %c0_1] : memref<16x256xf32, #tpu.memory_space<vmem>>, vector<16x256xf32>
    %c0_2 = arith.constant 0 : index
    %c0_3 = arith.constant 0 : index
    %4 = vector.load %arg2[%c0_2, %c0_3] : memref<16x224xbf16, #tpu.memory_space<vmem>>, vector<16x224xbf16>
    %c0_4 = arith.constant 0 : index
    %c0_5 = arith.constant 0 : index
    %5 = vector.load %arg3[%c0_4, %c0_5] : memref<224x256xbf16, #tpu.memory_space<vmem>>, vector<224x256xbf16>
    %cst = arith.constant dense<0.000000e+00> : vector<16x256xf32>
    %6 = tpu.matmul %4, %5, %cst {dimension_numbers = #tpu.dot_dimension_numbers<[1], [0], [0], [1], [0, 0, 1, 1], [], []>} : vector<16x224xbf16>, vector<224x256xbf16>, vector<16x256xf32> -> vector<16x256xf32>
    %7 = arith.addf %3, %6 : vector<16x256xf32>
    %c0_6 = arith.constant 0 : index
    %c0_7 = arith.constant 0 : index
    %8 = vector.load %arg5[%c0_6, %c0_7] : memref<16x256xf32, #tpu.memory_space<vmem>>, vector<16x256xf32>
    tpu.vector_store %arg5[%c0_6, %c0_7], %7 {strides = array<i32>} : memref<16x256xf32, #tpu.memory_space<vmem>>, vector<16x256xf32>,
    %c0_i32_8 = arith.constant 0 : i32
    %9 = arith.cmpi eq, %arg1, %c0_i32_8 : i32
    %10 = arith.extui %9 : i1 to i32
    %c0_i32_9 = arith.constant 0 : i32
    %11 = arith.cmpi ne, %10, %c0_i32_9 : i32
    scf.if %11 {
      %c0_10 = arith.constant 0 : index
      %c0_11 = arith.constant 0 : index
      %12 = vector.load %arg5[%c0_10, %c0_11] : memref<16x256xf32, #tpu.memory_space<vmem>>, vector<16x256xf32>
      %c0_12 = arith.constant 0 : index
      %c0_13 = arith.constant 0 : index
      %13 = vector.load %arg4[%c0_12, %c0_13] : memref<16x256xf32, #tpu.memory_space<vmem>>, vector<16x256xf32>
      tpu.vector_store %arg4[%c0_12, %c0_13], %12 {strides = array<i32>} : memref<16x256xf32, #tpu.memory_space<vmem>>, vector<16x256xf32>,
    } else {
    }
    return
  }
  func.func @transform_0(%arg0: i32, %arg1: i32) -> (i32, i32) {
    %c0_i32 = arith.constant 0 : i32
    %c0_i32_0 = arith.constant 0 : i32
    return %c0_i32, %arg1 : i32, i32
  }
  func.func @transform_1(%arg0: i32, %arg1: i32) -> (i32, i32) {
    %c0_i32 = arith.constant 0 : i32
    return %arg1, %arg0 : i32, i32
  }
  func.func @transform_2(%arg0: i32, %arg1: i32) -> (i32, i32) {
    %c0_i32 = arith.constant 0 : i32
    %c0_i32_0 = arith.constant 0 : i32
    return %c0_i32, %arg0 : i32, i32
  }
}

</mosaic_0001>

<bundles_post_ra>
// kernel: custom-call.1
= control target key start
LH: loop header
LB: loop body
LE: loop exit
PB: predicated region body
PF: predicated region fallthrough
CT: control target
= control target key end

     0   :  { %s217_s0 = inlined_call_operand.vmem [shape: c64[2,2,4,8,8], index: 0, kind: input, shape index: {}]   ;;  %s218_s1 = inlined_call_operand.vmem [shape: f32[2,2,4,8,8], index: 1, kind: output, shape index: {}]  }
   0x1   :  { %v80_v0 = vld [vmem:[%s217_s0 + $0x80] sm:$0xff]  ;;  %v81_v1 = vld [vmem:[%s217_s0 + $0x88] sm:$0xff]  ;;  %v83_v2 = vld [vmem:[%s217_s0 + $0x90] sm:$0xff] }
   0x2   :  { %4 = vst [vmem:[%s218_s1] sm:$0xff] %v80_v0  ;;  %v85_v3 = vld [vmem:[%s217_s0 + $0x98] sm:$0xff]  ;;  %v87_v4 = vld [vmem:[%s217_s0 + $0xa0] sm:$0xff]  ;;  %v89_v5 = vld [vmem:[%s217_s0 + $0xa8] sm:$0xff] }
   0x3   :  { %82 = vst [vmem:[%s218_s1 + $0x8] sm:$0xff] %v81_v1  ;;  %v91_v6 = vld [vmem:[%s217_s0 + $0xb0] sm:$0xff]  ;;  %v93_v7 = vld [vmem:[%s217_s0 + $0xb8] sm:$0xff]  ;;  %v95_v8 = vld [vmem:[%s217_s0 + $0xc0] sm:$0xff] }
   0x4   :  { %84 = vst [vmem:[%s218_s1 + $0x10] sm:$0xff] %v83_v2  ;;  %v97_v9 = vld [vmem:[%s217_s0 + $0xc8] sm:$0xff]  ;;  %v99_v10 = vld [vmem:[%s217_s0 + $0xd0] sm:$0xff]  ;;  %v101_v11 = vld [vmem:[%s217_s0 + $0xd8] sm:$0xff] }
   0x5   :  { %86 = vst [vmem:[%s218_s1 + $0x18] sm:$0xff] %v85_v3  ;;  %v103_v12 = vld [vmem:[%s217_s0 + $0xe0] sm:$0xff]  ;;  %v105_v13 = vld [vmem:[%s217_s0 + $0xe8] sm:$0xff]  ;;  %v107_v14 = vld [vmem:[%s217_s0 + $0xf0] sm:$0xff] }
   0x6   :  { %88 = vst [vmem:[%s218_s1 + $0x20] sm:$0xff] %v87_v4  ;;  %v109_v15 = vld [vmem:[%s217_s0 + $0xf8] sm:$0xff] }
   0x7   :  { %90 = vst [vmem:[%s218_s1 + $0x28] sm:$0xff] %v89_v5 }
   0x8   :  { %92 = vst [vmem:[%s218_s1 + $0x30] sm:$0xff] %v91_v6 }
   0x9   :  { %94 = vst [vmem:[%s218_s1 + $0x38] sm:$0xff] %v93_v7 }
   0xa   :  { %96 = vst [vmem:[%s218_s1 + $0x40] sm:$0xff] %v95_v8 }
   0xb   :  { %98 = vst [vmem:[%s218_s1 + $0x48] sm:$0xff] %v97_v9 }
   0xc   :  { %100 = vst [vmem:[%s218_s1 + $0x50] sm:$0xff] %v99_v10 }
   0xd   :  { %102 = vst [vmem:[%s218_s1 + $0x58] sm:$0xff] %v101_v11 }
   0xe   :  { %104 = vst [vmem:[%s218_s1 + $0x60] sm:$0xff] %v103_v12 }
   0xf   :  { %106 = vst [vmem:[%s218_s1 + $0x68] sm:$0xff] %v105_v13 }
  0x10   :  { %108 = vst [vmem:[%s218_s1 + $0x70] sm:$0xff] %v107_v14 }
  0x11   :  { %110 = vst [vmem:[%s218_s1 + $0x78] sm:$0xff] %v109_v15 }

// kernel: custom-call
= control target key start
LH: loop header
LB: loop body
LE: loop exit
PB: predicated region body
PF: predicated region fallthrough
CT: control target
= control target key end

     0   :  { %s200_s0 = inlined_call_operand.vmem [shape: c64[2,2,4,8,8], index: 0, kind: input, shape index: {}]   ;;  %s201_s1 = inlined_call_operand.vmem [shape: f32[2,2,4,8,8], index: 1, kind: output, shape index: {}]  }
   0x1   :  { %v2_v0 = vld [vmem:[%s200_s0] sm:$0xff]  ;;  %v64_v1 = vld [vmem:[%s200_s0 + $0x8] sm:$0xff]  ;;  %v66_v2 = vld [vmem:[%s200_s0 + $0x10] sm:$0xff] }
   0x2   :  { %3 = vst [vmem:[%s201_s1] sm:$0xff] %v2_v0  ;;  %v68_v3 = vld [vmem:[%s200_s0 + $0x18] sm:$0xff]  ;;  %v70_v4 = vld [vmem:[%s200_s0 + $0x20] sm:$0xff]  ;;  %v72_v5 = vld [vmem:[%s200_s0 + $0x28] sm:$0xff] }
   0x3   :  { %65 = vst [vmem:[%s201_s1 + $0x8] sm:$0xff] %v64_v1  ;;  %v74_v6 = vld [vmem:[%s200_s0 + $0x30] sm:$0xff]  ;;  %v76_v7 = vld [vmem:[%s200_s0 + $0x38] sm:$0xff]  ;;  %v78_v8 = vld [vmem:[%s200_s0 + $0x40] sm:$0xff] }
   0x4   :  { %67 = vst [vmem:[%s201_s1 + $0x10] sm:$0xff] %v66_v2  ;;  %v80_v9 = vld [vmem:[%s200_s0 + $0x48] sm:$0xff]  ;;  %v82_v10 = vld [vmem:[%s200_s0 + $0x50] sm:$0xff]  ;;  %v84_v11 = vld [vmem:[%s200_s0 + $0x58] sm:$0xff] }
   0x5   :  { %69 = vst [vmem:[%s201_s1 + $0x18] sm:$0xff] %v68_v3  ;;  %v86_v12 = vld [vmem:[%s200_s0 + $0x60] sm:$0xff]  ;;  %v88_v13 = vld [vmem:[%s200_s0 + $0x68] sm:$0xff]  ;;  %v90_v14 = vld [vmem:[%s200_s0 + $0x70] sm:$0xff] }
   0x6   :  { %71 = vst [vmem:[%s201_s1 + $0x20] sm:$0xff] %v70_v4  ;;  %v92_v15 = vld [vmem:[%s200_s0 + $0x78] sm:$0xff] }
   0x7   :  { %73 = vst [vmem:[%s201_s1 + $0x28] sm:$0xff] %v72_v5 }
   0x8   :  { %75 = vst [vmem:[%s201_s1 + $0x30] sm:$0xff] %v74_v6 }
   0x9   :  { %77 = vst [vmem:[%s201_s1 + $0x38] sm:$0xff] %v76_v7 }
   0xa   :  { %79 = vst [vmem:[%s201_s1 + $0x40] sm:$0xff] %v78_v8 }
   0xb   :  { %81 = vst [vmem:[%s201_s1 + $0x48] sm:$0xff] %v80_v9 }
   0xc   :  { %83 = vst [vmem:[%s201_s1 + $0x50] sm:$0xff] %v82_v10 }
   0xd   :  { %85 = vst [vmem:[%s201_s1 + $0x58] sm:$0xff] %v84_v11 }
   0xe   :  { %87 = vst [vmem:[%s201_s1 + $0x60] sm:$0xff] %v86_v12 }
   0xf   :  { %89 = vst [vmem:[%s201_s1 + $0x68] sm:$0xff] %v88_v13 }
  0x10   :  { %91 = vst [vmem:[%s201_s1 + $0x70] sm:$0xff] %v90_v14 }
  0x11   :  { %93 = vst [vmem:[%s201_s1 + $0x78] sm:$0xff] %v92_v15 }

// kernel: _forward_impl.2
= control target key start
LH: loop header
LB: loop body
LE: loop exit
PB: predicated region body
PF: predicated region fallthrough
CT: control target
= control target key end

     0   :  { %s724_s9 = smov 0   ;;  %s726_s10 = smov 0   ;;  %s833_s0 = inlined_call_operand.vmem [shape: bf16[16,112], index: 0, kind: input, shape index: {}]   ;;  %s834_s1 = inlined_call_operand.vmem [shape: bf16[112,512], index: 1, kind: input, shape index: {}]   ;;  %s835_s2 = inlined_call_operand.vmem [shape: f32[16,512], index: 2, kind: output, shape index: {}]  }
   0x1   :  { %s728_s11 = smov 0   ;;  %s730_s12 = smov 0  }
   0x2   :  { %s732_s13 = smov 0  }
   0x3 LB: > { %s24_s14 = sadd.s32 1, %s703_s12  ;;  %s534_s15 = sadd.s32 4294967295, %s707_s13   ;;  %s707_s13 = sphi %s732_s13, %s12_s13   ;;  %s703_s12 = sphi %s730_s12, %s840_s12   ;;  %s699_s11 = sphi %s728_s11, %s839_s11   ;;  %s695_s10 = sphi %s726_s10, %s838_s10   ;;  %s691_s9 = sphi %s724_s9, %s837_s9  }
   0x4   : > { %p26_p0 = scmp.ge.s32.totalorder %s24_s14, 2  ;;  %p66_p1 = scmp.ne.s32.totalorder %s695_s10, %s691_s9 }
   0x5   : > { %p67_p2 = scmp.eq.s32.totalorder %s707_s13, 0  ;;  %p96_p4 = scmp.eq.s32.totalorder %s534_s15, 1 }
   0x6   : > { %s842_s14 = smov (%p26_p0, %s24_s14), 0  ;;  %s59_s17 = sadd.s32 1, %s695_s10 }
   0x7   : > { %p68_p3 = por %p67_p2, %p66_p1  ;;  %s55_s16 = ssub.s32 %s703_s12, %s842_s14 }
   0x8   : > { %p57_p5 = scmp.eq.s32.totalorder %s55_s16, 0  ;;  %p759_p6 = por %p96_p4, %p66_p1 }
   0x9   : > { %p538_p7 = scmp.ge.s32.totalorder %s707_s13, 2 }
   0xa   : > { %s764_s19 = scalar_select %p57_p5, %s695_s10, %s59_s17  }
   0xb   : > { %125 = sbr.rel (%p538_p7) target bundleno = 34 (0x22), region = 20 }
  0x10   : > { %128 = sbr.rel (!%p68_p3) target bundleno = 34 (0x22), region = 24  ;;  %s130_s20 = sand.u32 (%p68_p3), 1, %s695_s10  }
  0x11   : > { %s610_s21 = sshll.u32 (%p68_p3), %s703_s12, 3  ;;  %s627_s22 = smul.u32 (%p68_p3), 112, %s130_s20 }
  0x12   : > { %s138_s25 = scalar_lea.vmem (%p68_p3), %s834_s1, %s610_s21 }
  0x13   : > { %v193_v0 = vld [vmem:[%s138_s25] sm:$0xff] (%p68_p3)  ;;  %v195_v1 = vld [vmem:[%s138_s25 + $0x10] sm:$0xff] (%p68_p3)  ;;  %s132_s26 = scalar_lea.vmem (%p68_p3), [#allocation3], %s627_s22 }
  0x14   : > { %v197_v2 = vld [vmem:[%s138_s25 + $0x20] sm:$0xff] (%p68_p3)  ;;  %194 = vst [vmem:[%s132_s26] sm:$0xff] (%p68_p3), %v193_v0  ;;  %v199_v3 = vld [vmem:[%s138_s25 + $0x30] sm:$0xff] (%p68_p3) }
  0x15   : > { %196 = vst [vmem:[%s132_s26 + $0x8] sm:$0xff] %v195_v1  ;;  %v201_v4 = vld [vmem:[%s138_s25 + $0x40] sm:$0xff]  ;;  %v203_v5 = vld [vmem:[%s138_s25 + $0x50] sm:$0xff] }
  0x16   : > { %198 = vst [vmem:[%s132_s26 + $0x10] sm:$0xff] %v197_v2  ;;  %v205_v6 = vld [vmem:[%s138_s25 + $0x60] sm:$0xff]  ;;  %v207_v7 = vld [vmem:[%s138_s25 + $0x70] sm:$0xff] }
  0x17   : > { %200 = vst [vmem:[%s132_s26 + $0x18] sm:$0xff] %v199_v3  ;;  %v209_v8 = vld [vmem:[%s138_s25 + $0x80] sm:$0xff]  ;;  %v211_v9 = vld [vmem:[%s138_s25 + $0x90] sm:$0xff] }
  0x18   : > { %202 = vst [vmem:[%s132_s26 + $0x20] sm:$0xff] %v201_v4  ;;  %v213_v10 = vld [vmem:[%s138_s25 + $0xa0] sm:$0xff]  ;;  %v215_v11 = vld [vmem:[%s138_s25 + $0xb0] sm:$0xff] }
  0x19   : > { %204 = vst [vmem:[%s132_s26 + $0x28] sm:$0xff] %v203_v5  ;;  %v217_v12 = vld [vmem:[%s138_s25 + $0xc0] sm:$0xff]  ;;  %v219_v13 = vld [vmem:[%s138_s25 + $0xd0] sm:$0xff] }
  0x1a   : > { %206 = vst [vmem:[%s132_s26 + $0x30] sm:$0xff] %v205_v6 }
  0x1b   : > { %208 = vst [vmem:[%s132_s26 + $0x38] sm:$0xff] %v207_v7 }
  0x1c   : > { %210 = vst [vmem:[%s132_s26 + $0x40] sm:$0xff] %v209_v8 }
  0x1d   : > { %212 = vst [vmem:[%s132_s26 + $0x48] sm:$0xff] %v211_v9 }
  0x1e   : > { %214 = vst [vmem:[%s132_s26 + $0x50] sm:$0xff] %v213_v10 }
  0x1f   : > { %216 = vst [vmem:[%s132_s26 + $0x58] sm:$0xff] %v215_v11 }
  0x20   : > { %218 = vst [vmem:[%s132_s26 + $0x60] sm:$0xff] %v217_v12 }
  0x21   : > { %220 = vst [vmem:[%s132_s26 + $0x68] sm:$0xff] %v219_v13 }
  0x22 PF: > { %p541_p8 = scmp.ge.s32.totalorder %s707_s13, 1  ;;  %p225_p9 = scmp.lt.s32.totalorder %s707_s13, 3 }
  0x24   : > { %p226_p10 = pnand %p541_p8, %p225_p9 }
  0x25   : > { %s232_s27 = sand.u32 (!%p226_p10), 1, %s691_s9  }
  0x26   : > { %229 = sbr.rel (%p226_p10) target bundleno = 217 (0xd9), region = 62  ;;  %s542_s4 = sshll.u32 (!%p226_p10), %s232_s27, 5 }
  0x27   : > { %s628_s28 = smul.u32 (!%p226_p10), 112, %s232_s27  ;;  %s255_s5 = scalar_lea.vmem (!%p226_p10), [#allocation4], %s542_s4 }
  0x29   : > { %s777_s29 = scalar_lea.vmem (!%p226_p10), [#allocation3], %s628_s28 }
  0x2b   : > { %v597_v14 = vld [vmem:[%s777_s29 + $0x60] sm:$0xf]  ;;  %v625_v15 = vld [vmem:[%s777_s29 + $0x64] sm:$0xf0]  ;;  %v624_v16 = vld [vmem:[%s777_s29 + $0x64] sm:$0xf] }
  0x2c   : > { %v598_v17 = vor.u32 %v625_v15, %v597_v14  ;;  %v599_v18 = vld [vmem:[%s777_s29 + $0x68] sm:$0xf0]  ;;  %v589_v19 = vld [vmem:[%s777_s29 + $0x50] sm:$0xf]  ;;  %v623_v20 = vld [vmem:[%s777_s29 + $0x54] sm:$0xf0] }
  0x2d   : > { %v602_v21 = vor.u32 %v624_v16, %v599_v18  ;;  %v622_v22 = vld [vmem:[%s777_s29 + $0x54] sm:$0xf]  ;;  %v591_v23 = vld [vmem:[%s777_s29 + $0x58] sm:$0xf0]  ;;  %v590_v24 = vor.u32 %v623_v20, %v589_v19  ;;  %v581_v26 = vld [vmem:[%s777_s29 + $0x40] sm:$0xf] }
  0x2e   : > { %372 = vmatpush.bf16.msra.mxu0 %v598_v17  ;;  %v594_v25 = vor.u32 %v622_v22, %v591_v23  ;;  %v621_v27 = vld [vmem:[%s777_s29 + $0x44] sm:$0xf0]  ;;  %v620_v28 = vld [vmem:[%s777_s29 + $0x44] sm:$0xf]  ;;  %v583_v29 = vld [vmem:[%s777_s29 + $0x48] sm:$0xf0] }
  0x2f   : > { %386 = vmatpush.bf16.msra.mxu1 %v602_v21  ;;  %v582_v30 = vor.u32 %v621_v27, %v581_v26  ;;  %v586_v31 = vor.u32 %v620_v28, %v583_v29  ;;  %v573_v32 = vld [vmem:[%s777_s29 + $0x30] sm:$0xf]  ;;  %v619_v33 = vld [vmem:[%s777_s29 + $0x34] sm:$0xf0]  ;;  %v618_v34 = vld [vmem:[%s777_s29 + $0x34] sm:$0xf] }
  0x30   : > { %v575_v35 = vld [vmem:[%s777_s29 + $0x38] sm:$0xf0]  ;;  %v574_v36 = vor.u32 %v619_v33, %v573_v32  ;;  %v565_v38 = vld [vmem:[%s777_s29 + $0x20] sm:$0xf]  ;;  %v617_v39 = vld [vmem:[%s777_s29 + $0x24] sm:$0xf0] }
  0x31   : > { %v578_v37 = vor.u32 %v618_v34, %v575_v35  ;;  %v616_v40 = vld [vmem:[%s777_s29 + $0x24] sm:$0xf]  ;;  %v567_v41 = vld [vmem:[%s777_s29 + $0x28] sm:$0xf0]  ;;  %v566_v42 = vor.u32 %v617_v39, %v565_v38  ;;  %v557_v44 = vld [vmem:[%s777_s29 + $0x10] sm:$0xf] }
  0x32   : > { %373 = vmatpush.bf16.msra.mxu0 %v590_v24  ;;  %v570_v43 = vor.u32 %v616_v40, %v567_v41  ;;  %v615_v45 = vld [vmem:[%s777_s29 + $0x14] sm:$0xf0]  ;;  %v614_v46 = vld [vmem:[%s777_s29 + $0x14] sm:$0xf]  ;;  %v559_v47 = vld [vmem:[%s777_s29 + $0x18] sm:$0xf0] }
  0x33   : > { %387 = vmatpush.bf16.msra.mxu1 %v594_v25  ;;  %v558_v48 = vor.u32 %v615_v45, %v557_v44  ;;  %v562_v49 = vor.u32 %v614_v46, %v559_v47  ;;  %v549_v50 = vld [vmem:[%s777_s29] sm:$0xf]  ;;  %v613_v51 = vld [vmem:[%s777_s29 + $0x4] sm:$0xf0]  ;;  %v612_v52 = vld [vmem:[%s777_s29 + $0x4] sm:$0xf] }
  0x34   : > { %v551_v53 = vld [vmem:[%s777_s29 + $0x8] sm:$0xf0]  ;;  %v550_v54 = vor.u32 %v613_v51, %v549_v50  ;;  %v611_v56 = vld [vmem:[%s833_s0] sm:$0xff]  ;;  %vm367_vm0 = vcmask 916480   ;;  %s626_s6 = sshll.u32 (%p759_p6), %s699_s11, 4 }
  0x35   : > { %v554_v55 = vor.u32 %v612_v52, %v551_v53  ;;  %s427_s9 = scalar_lea.vmem (%p759_p6), %s835_s2, %s626_s6 }
  0x36   : > { %374 = vmatpush.bf16.msra.mxu0 %v582_v30 }
  0x37   : > { %388 = vmatpush.bf16.msra.mxu1 %v586_v31 }
  0x3a   : > { %375 = vmatpush.bf16.msra.mxu0 %v574_v36 }
  0x3b   : > { %389 = vmatpush.bf16.msra.mxu1 %v578_v37 }
  0x3e   : > { %376 = vmatpush.bf16.msra.mxu0 %v566_v42 }
  0x3f   : > { %390 = vmatpush.bf16.msra.mxu1 %v570_v43 }
  0x42   : > { %377 = vmatpush.bf16.msra.mxu0 %v558_v48 }
  0x43   : > { %391 = vmatpush.bf16.msra.mxu1 %v562_v49 }
  0x46   : > { %378 = vmatpush.bf16.msra.mxu0 %v550_v54 }
  0x47   : > { %392 = vmatpush.bf16.msra.mxu1 %v554_v55 }
  0x49   : > { %603 = vmatmul.msk.bf16.vlgmr.msra.gmra.mxu0 %vm367_vm0, %v611_v56 }
  0x4a   : > { %604 = vmatmul.msk.bf16.vlgmr.msra.gmra.mxu1 %vm367_vm0, %v611_v56 }
  0xc6   : > { %v380_v57 = vpop.f32.mrf.mxu0 }
  0xc7   : > { %414 = vst [vmem:[%s255_s5] sm:$0xff] %v380_v57  ;;  %v394_v58 = vpop.f32.mrf.mxu1 }
  0xc8   : > { %415 = vst [vmem:[%s255_s5 + $0x8] sm:$0xff] %v394_v58 }
  0xcc   : > { %424 = sbr.rel (!%p759_p6) target bundleno = 217 (0xd9), region = 78 }
  0xce   : > { %v382_v59 = vpop.f32.mrf.mxu0  ;;  %v440_v61 = vld [vmem:[%s255_s5] sm:$0xff] (%p759_p6) }
  0xcf   : > { %416 = vst [vmem:[%s255_s5 + $0x10] sm:$0xff] %v382_v59  ;;  %v396_v60 = vpop.f32.mrf.mxu1  ;;  %v442_v62 = vld [vmem:[%s255_s5 + $0x8] sm:$0xff] (%p759_p6) }
  0xd0   : > { %417 = vst [vmem:[%s255_s5 + $0x18] sm:$0xff] %v396_v60 }
  0xd1   : > { %441 = vst [vmem:[%s427_s9] sm:$0xff] %v440_v61 }
  0xd2   : > { %443 = vst [vmem:[%s427_s9 + $0x8] sm:$0xff] %v442_v62 }
  0xd6   : > { %v444_v63 = vld [vmem:[%s255_s5 + $0x10] sm:$0xff] }
  0xd7   : > { %v446_v0 = vld [vmem:[%s255_s5 + $0x18] sm:$0xff]  ;;  %445 = vst [vmem:[%s427_s9 + $0x20] sm:$0xff] %v444_v63 }
  0xd8   : > { %447 = vst [vmem:[%s427_s9 + $0x28] sm:$0xff] %v446_v0 }
  0xd9 PF: > { %s12_s13 = sadd.s32 1, %s707_s13   ;;  %s837_s9 = smov %s695_s10 }
  0xda   : > { %p9_p11 = scmp.ge.s32.totalorder %s12_s13, 4   ;;  %s838_s10 = smov %s764_s19 }
  0xdb   : > { %s839_s11 = smov %s703_s12  ;;  %s840_s12 = smov %s842_s14 }
  0xdc   :  { %11 = sbr.rel (!%p9_p11) target bundleno = 3 (0x3), region = 135 }

// kernel: custom-call.2
= control target key start
LH: loop header
LB: loop body
LE: loop exit
PB: predicated region body
PF: predicated region fallthrough
CT: control target
= control target key end

     0   :  { %s105_s0 = inlined_call_operand.vmem [shape: f32[2,4,4,8,8], index: 0, kind: input, shape index: {}]   ;;  %s106_s1 = inlined_call_operand.vmem [shape: f32[2,4,4,8,8], index: 1, kind: input, shape index: {}]   ;;  %s107_s2 = inlined_call_operand.hbm [shape: c64[2,4,4,8,8], index: 2, kind: output, shape index: {}]  }
   0x1   :  { %s3_s11 = scalar_lea.hbm %s107_s2, 256 }
   0x2   :  { %4 = vsyncpa [#allocation0], 0  ;;  %s6_s14 = sshll.u32 %s105_s0, 4  ;;  %s8_s17 = sshll.u32 %s107_s2, 4  ;;  %s7_s14 = int_to_ptr.vmem [resolvable:$true] %s6_s14  ;;  %s9_s17 = int_to_ptr.hbm [resolvable:$true] %s8_s17 }
   0x3   :  { %11 = dma.vmem_to_hbm [thread:$0]  %s7_s14, 4096, %s9_s17, [#allocation0] }
   0x4   :  { %74 = dma.done.wait [#allocation0], 4096  }
   0x5   :  { %75 = vsyncadd [#allocation0], 4294963200 }
   0x6   :  { %14 = vsyncpa [#allocation0], 1 }
   0x7   :  { %15 = vsyncpa [#allocation1], 0  ;;  %s17_s20 = sshll.u32 %s106_s1, 4  ;;  %s19_s21 = sshll.u32 %s3_s11, 4  ;;  %s18_s20 = int_to_ptr.vmem [resolvable:$true] %s17_s20  ;;  %s20_s21 = int_to_ptr.hbm [resolvable:$true] %s19_s21 }
   0x8   :  { %22 = dma.vmem_to_hbm [thread:$0]  %s18_s20, 4096, %s20_s21, [#allocation1] }
   0x9   :  { %76 = dma.done.wait [#allocation1], 4096  }
   0xa   :  { %77 = vsyncadd [#allocation1], 4294963200 }
   0xb   :  { %25 = vsyncpa [#allocation1], 1 }

// kernel: _forward_impl.3
= control target key start
LH: loop header
LB: loop body
LE: loop exit
PB: predicated region body
PF: predicated region fallthrough
CT: control target
= control target key end

     0   :  { %s976_s9 = smov 0   ;;  %s978_s10 = smov 0   ;;  %s1184_s0 = inlined_call_operand.vmem [shape: bf16[16,224], index: 0, kind: input, shape index: {}]   ;;  %s1185_s1 = inlined_call_operand.vmem [shape: bf16[224,512], index: 1, kind: input, shape index: {}]   ;;  %s1186_s2 = inlined_call_operand.vmem [shape: f32[16,512], index: 2, kind: output, shape index: {}]  }
   0x1   :  { %s980_s11 = smov 0   ;;  %s982_s12 = smov 0  }
   0x2   :  { %s984_s13 = smov 0  }
   0x3 LB: > { %s24_s14 = sadd.s32 1, %s955_s12  ;;  %s711_s15 = sadd.s32 4294967295, %s959_s13   ;;  %s959_s13 = sphi %s984_s13, %s12_s13   ;;  %s955_s12 = sphi %s982_s12, %s1191_s12   ;;  %s951_s11 = sphi %s980_s11, %s1190_s11   ;;  %s947_s10 = sphi %s978_s10, %s1189_s10   ;;  %s943_s9 = sphi %s976_s9, %s1188_s9  }
   0x4   : > { %p26_p0 = scmp.ge.s32.totalorder %s24_s14, 2  ;;  %p66_p1 = scmp.ne.s32.totalorder %s947_s10, %s943_s9 }
   0x5   : > { %p67_p2 = scmp.eq.s32.totalorder %s959_s13, 0  ;;  %p96_p4 = scmp.eq.s32.totalorder %s711_s15, 1 }
   0x6   : > { %s1193_s14 = smov (%p26_p0, %s24_s14), 0  ;;  %s59_s17 = sadd.s32 1, %s947_s10 }
   0x7   : > { %p68_p3 = por %p67_p2, %p66_p1  ;;  %s55_s16 = ssub.s32 %s955_s12, %s1193_s14 }
   0x8   : > { %p57_p5 = scmp.eq.s32.totalorder %s55_s16, 0  ;;  %p1011_p6 = por %p96_p4, %p66_p1 }
   0x9   : > { %p715_p7 = scmp.ge.s32.totalorder %s959_s13, 2 }
   0xa   : > { %s1016_s19 = scalar_select %p57_p5, %s947_s10, %s59_s17  }
   0xb   : > { %127 = sbr.rel (%p715_p7) target bundleno = 48 (0x30), region = 20 }
  0x10   : > { %130 = sbr.rel (!%p68_p3) target bundleno = 48 (0x30), region = 24  ;;  %s132_s20 = sand.u32 (%p68_p3), 1, %s947_s10  }
  0x11   : > { %s847_s21 = sshll.u32 (%p68_p3), %s955_s12, 3  ;;  %s879_s22 = smul.u32 (%p68_p3), 224, %s132_s20 }
  0x12   : > { %s1024_s25 = scalar_lea.vmem (%p68_p3), %s1185_s1, %s847_s21 }
  0x13   : > { %v223_v0 = vld [vmem:[%s1024_s25] sm:$0xff] (%p68_p3)  ;;  %v225_v1 = vld [vmem:[%s1024_s25 + $0x10] sm:$0xff] (%p68_p3)  ;;  %s1029_s26 = scalar_lea.vmem (%p68_p3), [#allocation3], %s879_s22 }
  0x14   : > { %v227_v2 = vld [vmem:[%s1024_s25 + $0x20] sm:$0xff] (%p68_p3)  ;;  %224 = vst [vmem:[%s1029_s26] sm:$0xff] (%p68_p3), %v223_v0  ;;  %v229_v3 = vld [vmem:[%s1024_s25 + $0x30] sm:$0xff] (%p68_p3) }
  0x15   : > { %226 = vst [vmem:[%s1029_s26 + $0x8] sm:$0xff] %v225_v1  ;;  %v231_v4 = vld [vmem:[%s1024_s25 + $0x40] sm:$0xff]  ;;  %v233_v5 = vld [vmem:[%s1024_s25 + $0x50] sm:$0xff] }
  0x16   : > { %228 = vst [vmem:[%s1029_s26 + $0x10] sm:$0xff] %v227_v2  ;;  %v235_v6 = vld [vmem:[%s1024_s25 + $0x60] sm:$0xff]  ;;  %v237_v7 = vld [vmem:[%s1024_s25 + $0x70] sm:$0xff] }
  0x17   : > { %230 = vst [vmem:[%s1029_s26 + $0x18] sm:$0xff] %v229_v3  ;;  %v239_v8 = vld [vmem:[%s1024_s25 + $0x80] sm:$0xff]  ;;  %v241_v9 = vld [vmem:[%s1024_s25 + $0x90] sm:$0xff] }
  0x18   : > { %232 = vst [vmem:[%s1029_s26 + $0x20] sm:$0xff] %v231_v4  ;;  %v243_v10 = vld [vmem:[%s1024_s25 + $0xa0] sm:$0xff]  ;;  %v245_v11 = vld [vmem:[%s1024_s25 + $0xb0] sm:$0xff] }
  0x19   : > { %234 = vst [vmem:[%s1029_s26 + $0x28] sm:$0xff] %v233_v5  ;;  %v247_v12 = vld [vmem:[%s1024_s25 + $0xc0] sm:$0xff]  ;;  %v249_v13 = vld [vmem:[%s1024_s25 + $0xd0] sm:$0xff] }
  0x1a   : > { %236 = vst [vmem:[%s1029_s26 + $0x30] sm:$0xff] %v235_v6  ;;  %v251_v14 = vld [vmem:[%s1024_s25 + $0xe0] sm:$0xff]  ;;  %v253_v15 = vld [vmem:[%s1024_s25 + $0xf0] sm:$0xff] }
  0x1b   : > { %238 = vst [vmem:[%s1029_s26 + $0x38] sm:$0xff] %v237_v7  ;;  %v255_v16 = vld [vmem:[%s1024_s25 + $0x100] sm:$0xff]  ;;  %v257_v17 = vld [vmem:[%s1024_s25 + $0x110] sm:$0xff] }
  0x1c   : > { %240 = vst [vmem:[%s1029_s26 + $0x40] sm:$0xff] %v239_v8  ;;  %v259_v18 = vld [vmem:[%s1024_s25 + $0x120] sm:$0xff]  ;;  %v261_v19 = vld [vmem:[%s1024_s25 + $0x130] sm:$0xff] }
  0x1d   : > { %242 = vst [vmem:[%s1029_s26 + $0x48] sm:$0xff] %v241_v9  ;;  %v263_v20 = vld [vmem:[%s1024_s25 + $0x140] sm:$0xff]  ;;  %v265_v21 = vld [vmem:[%s1024_s25 + $0x150] sm:$0xff] }
  0x1e   : > { %244 = vst [vmem:[%s1029_s26 + $0x50] sm:$0xff] %v243_v10  ;;  %v267_v22 = vld [vmem:[%s1024_s25 + $0x160] sm:$0xff]  ;;  %v269_v23 = vld [vmem:[%s1024_s25 + $0x170] sm:$0xff] }
  0x1f   : > { %246 = vst [vmem:[%s1029_s26 + $0x58] sm:$0xff] %v245_v11  ;;  %v271_v24 = vld [vmem:[%s1024_s25 + $0x180] sm:$0xff]  ;;  %v273_v25 = vld [vmem:[%s1024_s25 + $0x190] sm:$0xff] }
  0x20   : > { %248 = vst [vmem:[%s1029_s26 + $0x60] sm:$0xff] %v247_v12  ;;  %v275_v26 = vld [vmem:[%s1024_s25 + $0x1a0] sm:$0xff]  ;;  %v277_v27 = vld [vmem:[%s1024_s25 + $0x1b0] sm:$0xff] }
  0x21   : > { %250 = vst [vmem:[%s1029_s26 + $0x68] sm:$0xff] %v249_v13 }
  0x22   : > { %252 = vst [vmem:[%s1029_s26 + $0x70] sm:$0xff] %v251_v14 }
  0x23   : > { %254 = vst [vmem:[%s1029_s26 + $0x78] sm:$0xff] %v253_v15 }
  0x24   : > { %256 = vst [vmem:[%s1029_s26 + $0x80] sm:$0xff] %v255_v16 }
  0x25   : > { %258 = vst [vmem:[%s1029_s26 + $0x88] sm:$0xff] %v257_v17 }
  0x26   : > { %260 = vst [vmem:[%s1029_s26 + $0x90] sm:$0xff] %v259_v18 }
  0x27   : > { %262 = vst [vmem:[%s1029_s26 + $0x98] sm:$0xff] %v261_v19 }
  0x28   : > { %264 = vst [vmem:[%s1029_s26 + $0xa0] sm:$0xff] %v263_v20 }
  0x29   : > { %266 = vst [vmem:[%s1029_s26 + $0xa8] sm:$0xff] %v265_v21 }
  0x2a   : > { %268 = vst [vmem:[%s1029_s26 + $0xb0] sm:$0xff] %v267_v22 }
  0x2b   : > { %270 = vst [vmem:[%s1029_s26 + $0xb8] sm:$0xff] %v269_v23 }
  0x2c   : > { %272 = vst [vmem:[%s1029_s26 + $0xc0] sm:$0xff] %v271_v24 }
  0x2d   : > { %274 = vst [vmem:[%s1029_s26 + $0xc8] sm:$0xff] %v273_v25 }
  0x2e   : > { %276 = vst [vmem:[%s1029_s26 + $0xd0] sm:$0xff] %v275_v26 }
  0x2f   : > { %278 = vst [vmem:[%s1029_s26 + $0xd8] sm:$0xff] %v277_v27 }
  0x30 PF: > { %p718_p8 = scmp.ge.s32.totalorder %s959_s13, 1  ;;  %p283_p9 = scmp.lt.s32.totalorder %s959_s13, 3 }
  0x32   : > { %p284_p10 = pnand %p718_p8, %p283_p9 }
  0x33   : > { %s290_s27 = sand.u32 (!%p284_p10), 1, %s943_s9  }
  0x34   : > { %287 = sbr.rel (%p284_p10) target bundleno = 243 (0xf3), region = 62  ;;  %s719_s16 = sshll.u32 (!%p284_p10), %s290_s27, 5 }
  0x35   : > { %s880_s28 = smul.u32 (!%p284_p10), 224, %s290_s27  ;;  %s314_s17 = scalar_lea.vmem (!%p284_p10), [#allocation4], %s719_s16 }
  0x37   : > { %s1089_s29 = scalar_lea.vmem (!%p284_p10), [#allocation3], %s880_s28 }
  0x39   : > { %v786_v28 = vld [vmem:[%s1089_s29 + $0x70] sm:$0xf]  ;;  %v865_v29 = vld [vmem:[%s1089_s29 + $0x74] sm:$0xf0]  ;;  %v864_v30 = vld [vmem:[%s1089_s29 + $0x74] sm:$0xf] }
  0x3a   : > { %v787_v31 = vor.u32 %v865_v29, %v786_v28  ;;  %v788_v32 = vld [vmem:[%s1089_s29 + $0x78] sm:$0xf0]  ;;  %v876_v33 = vld [vmem:[%s1089_s29 + $0xd4] sm:$0xf]  ;;  %v778_v37 = vld [vmem:[%s1089_s29 + $0x60] sm:$0xf] }
  0x3b   : > { %v836_v34 = vld [vmem:[%s1089_s29 + $0xd8] sm:$0xf0]  ;;  %v791_v35 = vor.u32 %v864_v30, %v788_v32  ;;  %v863_v38 = vld [vmem:[%s1089_s29 + $0x64] sm:$0xf0]  ;;  %v862_v39 = vld [vmem:[%s1089_s29 + $0x64] sm:$0xf] }
  0x3c   : > { %v839_v36 = vor.u32 %v876_v33, %v836_v34  ;;  %520 = vmatpush.bf16.msra.mxu0 %v787_v31  ;;  %v779_v40 = vor.u32 %v863_v38, %v778_v37  ;;  %v780_v41 = vld [vmem:[%s1089_s29 + $0x68] sm:$0xf0]  ;;  %v874_v42 = vld [vmem:[%s1089_s29 + $0xc4] sm:$0xf]  ;;  %v834_v46 = vld [vmem:[%s1089_s29 + $0xd0] sm:$0xf] }
  0x3d   : > { %v828_v43 = vld [vmem:[%s1089_s29 + $0xc8] sm:$0xf0]  ;;  %548 = vmatpush.bf16.msra.mxu2 %v791_v35  ;;  %v783_v44 = vor.u32 %v862_v39, %v780_v41  ;;  %v877_v47 = vld [vmem:[%s1089_s29 + $0xd4] sm:$0xf0]  ;;  %v770_v48 = vld [vmem:[%s1089_s29 + $0x50] sm:$0xf] }
  0x3e   : > { %564 = vmatpush.bf16.msra.mxu3 %v839_v36  ;;  %v831_v45 = vor.u32 %v874_v42, %v828_v43  ;;  %v835_v49 = vor.u32 %v877_v47, %v834_v46  ;;  %v861_v50 = vld [vmem:[%s1089_s29 + $0x54] sm:$0xf0]  ;;  %v860_v51 = vld [vmem:[%s1089_s29 + $0x54] sm:$0xf]  ;;  %v772_v52 = vld [vmem:[%s1089_s29 + $0x58] sm:$0xf0] }
  0x3f   : > { %v872_v53 = vld [vmem:[%s1089_s29 + $0xb4] sm:$0xf]  ;;  %v820_v54 = vld [vmem:[%s1089_s29 + $0xb8] sm:$0xf0]  ;;  %v826_v55 = vld [vmem:[%s1089_s29 + $0xc0] sm:$0xf]  ;;  %v771_v56 = vor.u32 %v861_v50, %v770_v48  ;;  %v775_v60 = vor.u32 %v860_v51, %v772_v52 }
  0x40   : > { %521 = vmatpush.bf16.msra.mxu0 %v779_v40  ;;  %536 = vmatpush.bf16.msra.mxu1 %v835_v49  ;;  %v875_v57 = vld [vmem:[%s1089_s29 + $0xc4] sm:$0xf0]  ;;  %v762_v58 = vld [vmem:[%s1089_s29 + $0x40] sm:$0xf]  ;;  %v823_v61 = vor.u32 %v872_v53, %v820_v54  ;;  %v858_v63 = vld [vmem:[%s1089_s29 + $0x44] sm:$0xf] }
  0x41   : > { %v859_v59 = vld [vmem:[%s1089_s29 + $0x44] sm:$0xf0]  ;;  %549 = vmatpush.bf16.msra.mxu2 %v783_v44  ;;  %v827_v62 = vor.u32 %v875_v57, %v826_v55  ;;  %v764_v0 = vld [vmem:[%s1089_s29 + $0x48] sm:$0xf0]  ;;  %v870_v1 = vld [vmem:[%s1089_s29 + $0xa4] sm:$0xf] }
  0x42   : > { %565 = vmatpush.bf16.msra.mxu3 %v831_v45  ;;  %v812_v2 = vld [vmem:[%s1089_s29 + $0xa8] sm:$0xf0]  ;;  %v818_v3 = vld [vmem:[%s1089_s29 + $0xb0] sm:$0xf]  ;;  %v873_v4 = vld [vmem:[%s1089_s29 + $0xb4] sm:$0xf0]  ;;  %v763_v5 = vor.u32 %v859_v59, %v762_v58  ;;  %v767_v9 = vor.u32 %v858_v63, %v764_v0 }
  0x43   : > { %v819_v6 = vor.u32 %v873_v4, %v818_v3  ;;  %v754_v7 = vld [vmem:[%s1089_s29 + $0x30] sm:$0xf]  ;;  %v857_v8 = vld [vmem:[%s1089_s29 + $0x34] sm:$0xf0]  ;;  %v815_v10 = vor.u32 %v870_v1, %v812_v2  ;;  %v856_v11 = vld [vmem:[%s1089_s29 + $0x34] sm:$0xf] }
  0x44   : > { %522 = vmatpush.bf16.msra.mxu0 %v771_v56  ;;  %537 = vmatpush.bf16.msra.mxu1 %v827_v62  ;;  %v810_v12 = vld [vmem:[%s1089_s29 + $0xa0] sm:$0xf]  ;;  %v871_v13 = vld [vmem:[%s1089_s29 + $0xa4] sm:$0xf0]  ;;  %v756_v14 = vld [vmem:[%s1089_s29 + $0x38] sm:$0xf0]  ;;  %v755_v17 = vor.u32 %v857_v8, %v754_v7 }
  0x45   : > { %550 = vmatpush.bf16.msra.mxu2 %v775_v60  ;;  %v868_v15 = vld [vmem:[%s1089_s29 + $0x94] sm:$0xf]  ;;  %v804_v16 = vld [vmem:[%s1089_s29 + $0x98] sm:$0xf0]  ;;  %v811_v18 = vor.u32 %v871_v13, %v810_v12  ;;  %v746_v19 = vld [vmem:[%s1089_s29 + $0x20] sm:$0xf]  ;;  %v759_v21 = vor.u32 %v856_v11, %v756_v14 }
  0x46   : > { %566 = vmatpush.bf16.msra.mxu3 %v823_v61  ;;  %v855_v20 = vld [vmem:[%s1089_s29 + $0x24] sm:$0xf0]  ;;  %v807_v22 = vor.u32 %v868_v15, %v804_v16  ;;  %v854_v23 = vld [vmem:[%s1089_s29 + $0x24] sm:$0xf]  ;;  %v802_v24 = vld [vmem:[%s1089_s29 + $0x90] sm:$0xf] }
  0x47   : > { %v869_v25 = vld [vmem:[%s1089_s29 + $0x94] sm:$0xf0]  ;;  %v748_v26 = vld [vmem:[%s1089_s29 + $0x28] sm:$0xf0]  ;;  %v866_v27 = vld [vmem:[%s1089_s29 + $0x84] sm:$0xf]  ;;  %v747_v29 = vor.u32 %v855_v20, %v746_v19 }
  0x48   : > { %523 = vmatpush.bf16.msra.mxu0 %v763_v5  ;;  %538 = vmatpush.bf16.msra.mxu1 %v819_v6  ;;  %v796_v28 = vld [vmem:[%s1089_s29 + $0x88] sm:$0xf0]  ;;  %v803_v30 = vor.u32 %v869_v25, %v802_v24  ;;  %v848_v31 = vld [vmem:[%s1184_s0 + $0x4] sm:$0xf]  ;;  %v751_v33 = vor.u32 %v854_v23, %v748_v26  ;;  %v738_v35 = vld [vmem:[%s1089_s29 + $0x10] sm:$0xf] }
  0x49   : > { %551 = vmatpush.bf16.msra.mxu2 %v767_v9  ;;  %v724_v32 = vld [vmem:[%s1184_s0 + $0x8] sm:$0xf0]  ;;  %v799_v34 = vor.u32 %v866_v27, %v796_v28  ;;  %v853_v36 = vld [vmem:[%s1089_s29 + $0x14] sm:$0xf0]  ;;  %v852_v37 = vld [vmem:[%s1089_s29 + $0x14] sm:$0xf] }
  0x4a   : > { %567 = vmatpush.bf16.msra.mxu3 %v815_v10  ;;  %v740_v38 = vld [vmem:[%s1089_s29 + $0x18] sm:$0xf0]  ;;  %v794_v39 = vld [vmem:[%s1089_s29 + $0x80] sm:$0xf]  ;;  %v867_v40 = vld [vmem:[%s1089_s29 + $0x84] sm:$0xf0]  ;;  %v727_v41 = vor.u32 %v848_v31, %v724_v32  ;;  %v739_v42 = vor.u32 %v853_v36, %v738_v35 }
  0x4b   : > { %vm516_vm0 = vcmask 785408   ;;  %v743_v43 = vor.u32 %v852_v37, %v740_v38  ;;  %v795_v44 = vor.u32 %v867_v40, %v794_v39  ;;  %v730_v45 = vld [vmem:[%s1089_s29] sm:$0xf]  ;;  %v851_v46 = vld [vmem:[%s1089_s29 + $0x4] sm:$0xf0]  ;;  %s878_s9 = sshll.u32 (%p1011_p6), %s951_s11, 4 }
  0x4c   : > { %524 = vmatpush.bf16.msra.mxu0 %v755_v17  ;;  %539 = vmatpush.bf16.msra.mxu1 %v811_v18  ;;  %v850_v47 = vld [vmem:[%s1089_s29 + $0x4] sm:$0xf]  ;;  %v732_v48 = vld [vmem:[%s1089_s29 + $0x8] sm:$0xf0]  ;;  %v731_v49 = vor.u32 %v851_v46, %v730_v45  ;;  %v722_v50 = vld [vmem:[%s1184_s0] sm:$0xf]  ;;  %s604_s22 = scalar_lea.vmem (%p1011_p6), %s1186_s2, %s878_s9 }
  0x4d   : > { %552 = vmatpush.bf16.msra.mxu2 %v759_v21  ;;  %v849_v51 = vld [vmem:[%s1184_s0 + $0x4] sm:$0xf0]  ;;  %v735_v52 = vor.u32 %v850_v47, %v732_v48 }
  0x4e   : > { %568 = vmatpush.bf16.msra.mxu3 %v807_v22  ;;  %v723_v53 = vor.u32 %v849_v51, %v722_v50 }
  0x50   : > { %525 = vmatpush.bf16.msra.mxu0 %v747_v29  ;;  %540 = vmatpush.bf16.msra.mxu1 %v803_v30 }
  0x51   : > { %553 = vmatpush.bf16.msra.mxu2 %v751_v33 }
  0x52   : > { %569 = vmatpush.bf16.msra.mxu3 %v799_v34 }
  0x54   : > { %526 = vmatpush.bf16.msra.mxu0 %v739_v42  ;;  %541 = vmatpush.bf16.msra.mxu1 %v795_v44 }
  0x55   : > { %841 = vmatmul.msk.bf16.vlgmr.msra.gmra.mxu3 %vm516_vm0, %v727_v41  ;;  %554 = vmatpush.bf16.msra.mxu2 %v743_v43 }
  0x57   : > { %840 = vmatmul.msk.bf16.vlgmr.msra.gmra.mxu1 %vm516_vm0, %v727_v41 }
  0x58   : > { %527 = vmatpush.bf16.msra.mxu0 %v731_v49 }
  0x59   : > { %555 = vmatpush.bf16.msra.mxu2 %v735_v52 }
  0x5b   : > { %528 = vmatmul.bf16.vlgmr.msra.gmra.mxu0 %v723_v53 }
  0x5c   : > { %556 = vmatmul.bf16.vlgmr.msra.gmra.mxu2 %v723_v53 }
  0xd4   : > { %v543_v54 = vpop.f32.mrf.mxu1 }
  0xd8   : > { %v529_v55 = vpop.f32.mrf.mxu0  ;;  %v571_v57 = vpop.f32.mrf.mxu3 }
  0xd9   : > { %v544_v56 = vadd.f32 %v543_v54, %v529_v55 }
  0xdb   : > { %591 = vst [vmem:[%s314_s17] sm:$0xff] %v544_v56 }
  0xdc   : > { %v545_v59 = vpop.f32.mrf.mxu1 }
  0xdf   : > { %v557_v58 = vpop.f32.mrf.mxu2 }
  0xe0   : > { %v572_v60 = vadd.f32 %v571_v57, %v557_v58  ;;  %v531_v61 = vpop.f32.mrf.mxu0  ;;  %v573_v63 = vpop.f32.mrf.mxu3 }
  0xe1   : > { %v546_v62 = vadd.f32 %v545_v59, %v531_v61 }
  0xe2   : > { %592 = vst [vmem:[%s314_s17 + $0x8] sm:$0xff] %v572_v60  ;;  %v617_v2 = vld [vmem:[%s314_s17] sm:$0xff] (%p1011_p6) }
  0xe3   : > { %593 = vst [vmem:[%s314_s17 + $0x10] sm:$0xff] %v546_v62 }
  0xe4   : > { %618 = vst [vmem:[%s604_s22] sm:$0xff] (%p1011_p6), %v617_v2 }
  0xe6   : > { %601 = sbr.rel (!%p1011_p6) target bundleno = 243 (0xf3), region = 78 }
  0xe7   : > { %v559_v0 = vpop.f32.mrf.mxu2 }
  0xe8   : > { %v574_v1 = vadd.f32 %v573_v63, %v559_v0 }
  0xe9   : > { %v619_v3 = vld [vmem:[%s314_s17 + $0x8] sm:$0xff] (%p1011_p6) }
  0xea   : > { %594 = vst [vmem:[%s314_s17 + $0x18] sm:$0xff] %v574_v1  ;;  %v621_v4 = vld [vmem:[%s314_s17 + $0x10] sm:$0xff] (%p1011_p6) }
  0xeb   : > { %620 = vst [vmem:[%s604_s22 + $0x8] sm:$0xff] %v619_v3 }
  0xec   : > { %622 = vst [vmem:[%s604_s22 + $0x20] sm:$0xff] %v621_v4 }
  0xf1   : > { %v623_v5 = vld [vmem:[%s314_s17 + $0x18] sm:$0xff] }
  0xf2   : > { %624 = vst [vmem:[%s604_s22 + $0x28] sm:$0xff] %v623_v5 }
  0xf3 PF: > { %s12_s13 = sadd.s32 1, %s959_s13   ;;  %s1188_s9 = smov %s947_s10 }
  0xf4   : > { %p9_p11 = scmp.ge.s32.totalorder %s12_s13, 4   ;;  %s1189_s10 = smov %s1016_s19 }
  0xf5   : > { %s1190_s11 = smov %s955_s12  ;;  %s1191_s12 = smov %s1193_s14 }
  0xf6   :  { %11 = sbr.rel (!%p9_p11) target bundleno = 3 (0x3), region = 135 }

</bundles_post_ra>
